<compile_context>
chip_gen: v7x
topology: tpu7x:2x2x1
jax: 0.10.0
libtpu: 0.0.40
codegen_flags: <defaults>
</compile_context>

<pallas_src>
import jax
import jax.numpy as jnp
from jax.experimental import pallas as pl
from jax.experimental.pallas import tpu as pltpu


FEAT = 128   # SimpleBody hidden size / feature_size()
HID = 512    # fc1 output size


def _round_up(n, m):
    return ((n + m - 1) // m) * m


def _choose_tb(batch):
    """Pick a batch tile minimizing padded rows; prefer 256 on ties (v7x dual-TC)."""
    if batch <= 256:
        return _round_up(batch, 16)
    best_tb, best_waste = None, None
    for cand in (256, 512, 1024):
        waste = _round_up(batch, cand) - batch
        if best_waste is None or waste < best_waste:
            best_tb, best_waste = cand, waste
    return best_tb


def qrdqn_kernel(x_ref, wb_ref, bb_ref, w1_ref, b1_ref, w2_ref, b2_ref, out_ref):
    # SimpleBody: Linear(in_dim -> 128) + ReLU   (bf16 MXU inputs, f32 accum).
    # x arrives as f32; cast to bf16 here (hidden under the MXU).
    x = x_ref[...].astype(jnp.bfloat16)
    h0 = jnp.dot(x, wb_ref[...], preferred_element_type=jnp.float32)
    h0 = jnp.maximum(h0 + bb_ref[...], 0.0)
    # fc1: Linear(128 -> 512) + ReLU
    h1 = jnp.dot(h0.astype(jnp.bfloat16), w1_ref[...],
                 preferred_element_type=jnp.float32)
    h1 = jnp.maximum(h1 + b1_ref[...], 0.0)
    # fc2: Linear(512 -> padded out_dim), no activation
    y = jnp.dot(h1.astype(jnp.bfloat16), w2_ref[...],
                preferred_element_type=jnp.float32)
    out_ref[...] = y + b2_ref[...]


def prepare_params(params, num_actions, quantiles):
    """One-time weight preprocessing: bf16 weights + lane-dense padding of fc2.

    Call once (e.g. at model load); reuse the result for every forward call.
    """
    wb, bb, w1, b1, w2, b2 = params
    out_dim = num_actions * quantiles
    out_pad = _round_up(out_dim, 128)          # e.g. 204 -> 256: lane-dense output slab

    wb_ = wb.astype(jnp.bfloat16)
    w1_ = w1.astype(jnp.bfloat16)
    w2_ = jnp.pad(w2, ((0, 0), (0, out_pad - out_dim))).astype(jnp.bfloat16)
    b2_ = jnp.pad(b2, ((0, 0), (0, out_pad - out_dim)))      # biases stay f32
    prepared = (wb_, bb, w1_, b1, w2_, b2_)
    return jax.tree_util.tree_map(jnp.asarray, prepared), out_pad


def qrdqn_forward(x, prepared, out_pad, num_actions, quantiles):
    """x: [B, in_dim] float32 -> [B, num_actions, quantiles] float32."""
    wb_, bb, w1_, b1, w2_, b2_ = prepared
    B, in_dim = x.shape
    out_dim = num_actions * quantiles

    # Batch tiling: choose tb to minimize padded work (see _choose_tb).
    tb = _choose_tb(B)
    b_pad = _round_up(B, tb)
    if b_pad != B:
        x = jnp.pad(x, ((0, b_pad - B), (0, 0)))
    grid = (b_pad // tb,)

    def batch_map(i):
        return (i, 0)

    def resident(i):                           # weights/biases: same block every step
        return (0, 0)

    y = pl.pallas_call(
        qrdqn_kernel,
        out_shape=jax.ShapeDtypeStruct((b_pad, out_pad), jnp.float32),
        grid=grid,
        in_specs=[
            pl.BlockSpec((tb, in_dim), batch_map),
            pl.BlockSpec(wb_.shape, resident),
            pl.BlockSpec(bb.shape, resident),
            pl.BlockSpec(w1_.shape, resident),
            pl.BlockSpec(b1.shape, resident),
            pl.BlockSpec(w2_.shape, resident),
            pl.BlockSpec(b2_.shape, resident),
        ],
        out_specs=pl.BlockSpec((tb, out_pad), batch_map),
        compiler_params=pltpu.CompilerParams(
            dimension_semantics=("parallel",)),
    )(x, wb_, bb, w1_, b1, w2_, b2_)

    # Strip batch/lane padding, then the final view(-1, num_actions, quantiles).
    return y[:B, :out_dim].reshape(-1, num_actions, quantiles)


def init_params(key, in_dim, num_actions, quantiles):
    """Deterministic init mimicking PyTorch nn.Linear default (U[-1/sqrt(fan_in), +])."""
    out_dim = num_actions * quantiles

    def linear(k, fan_in, fan_out):
        kw, kb = jax.random.split(k)
        bound = 1.0 / jnp.sqrt(jnp.float32(fan_in))
        w = jax.random.uniform(kw, (fan_in, fan_out), jnp.float32, -bound, bound)
        b = jax.random.uniform(kb, (1, fan_out), jnp.float32, -bound, bound)
        return w, b

    k0, k1, k2 = jax.random.split(key, 3)
    wb, bb = linear(k0, in_dim, FEAT)
    w1, b1 = linear(k1, FEAT, HID)
    w2, b2 = linear(k2, HID, out_dim)
    return (wb, bb, w1, b1, w2, b2)


if __name__ == "__main__":
    key = jax.random.PRNGKey(0)
    kx, kp = jax.random.split(key)

    # input_shape = (32,), num_actions = 4, quantiles = 51, batch = 8
    in_dim = 32
    num_actions = 4
    quantiles = 51
    batch = 8

    x = jax.random.normal(kx, (batch, in_dim), jnp.float32)
    params = init_params(kp, in_dim, num_actions, quantiles)

    # One-time weight preprocessing (hoisted out of the per-call path).
    prepared, out_pad = prepare_params(params, num_actions, quantiles)
    prepared = jax.block_until_ready(prepared)

    out = qrdqn_forward(x, prepared, out_pad, num_actions, quantiles)
    out = jax.block_until_ready(out)

    # Pure-JAX reference using the SAME bf16-weight / f32-accum math as the kernel.
    wb, bb, w1, b1, w2, b2 = params
    h0 = jnp.maximum(
        jnp.dot(x.astype(jnp.bfloat16), wb.astype(jnp.bfloat16),
                preferred_element_type=jnp.float32) + bb, 0.0)
    h1 = jnp.maximum(
        jnp.dot(h0.astype(jnp.bfloat16), w1.astype(jnp.bfloat16),
                preferred_element_type=jnp.float32) + b1, 0.0)
    ref = (jnp.dot(h1.astype(jnp.bfloat16), w2.astype(jnp.bfloat16),
                   preferred_element_type=jnp.float32) + b2
           ).reshape(-1, num_actions, quantiles)

    assert out.shape == (batch, num_actions, quantiles)
    assert jnp.allclose(out, ref, atol=1e-2, rtol=1e-2)

    print("KERNEL_OK")
</pallas_src>

<mosaic_0001>
module attributes {stable_mosaic.version = 11 : i64} {
  func.func @qrdqn_kernel(%arg0: i32, %arg1: memref<16x32xf32, #tpu.memory_space<vmem>>, %arg2: memref<32x128xbf16, #tpu.memory_space<vmem>>, %arg3: memref<1x128xf32, #tpu.memory_space<vmem>>, %arg4: memref<128x512xbf16, #tpu.memory_space<vmem>>, %arg5: memref<1x512xf32, #tpu.memory_space<vmem>>, %arg6: memref<512x256xbf16, #tpu.memory_space<vmem>>, %arg7: memref<1x256xf32, #tpu.memory_space<vmem>>, %arg8: memref<16x256xf32, #tpu.memory_space<vmem>>) attributes {dimension_semantics = [#tpu.dimension_semantics<parallel>], iteration_bounds = array<i64: 1>, scalar_prefetch = 0 : i64, scratch_operands = 0 : i64, tpu.core_type = #tpu.core_type<tc>, window_params = [{transform_indices = @transform_0, window_bounds = array<i64: 16, 32>}, {pipeline_mode = #tpu.pipeline_mode<synchronous>, transform_indices = @transform_1, window_bounds = array<i64: 32, 128>}, {pipeline_mode = #tpu.pipeline_mode<synchronous>, transform_indices = @transform_2, window_bounds = array<i64: 1, 128>}, {pipeline_mode = #tpu.pipeline_mode<synchronous>, transform_indices = @transform_3, window_bounds = array<i64: 128, 512>}, {pipeline_mode = #tpu.pipeline_mode<synchronous>, transform_indices = @transform_4, window_bounds = array<i64: 1, 512>}, {pipeline_mode = #tpu.pipeline_mode<synchronous>, transform_indices = @transform_5, window_bounds = array<i64: 512, 256>}, {pipeline_mode = #tpu.pipeline_mode<synchronous>, transform_indices = @transform_6, window_bounds = array<i64: 1, 256>}, {transform_indices = @transform_7, window_bounds = array<i64: 16, 256>}]} {
    %c0 = arith.constant 0 : index
    %c0_0 = arith.constant 0 : index
    %0 = vector.load %arg1[%c0, %c0_0] : memref<16x32xf32, #tpu.memory_space<vmem>>, vector<16x32xf32>
    %1 = arith.truncf %0 : vector<16x32xf32> to vector<16x32xbf16>
    %c0_1 = arith.constant 0 : index
    %c0_2 = arith.constant 0 : index
    %2 = vector.load %arg2[%c0_1, %c0_2] : memref<32x128xbf16, #tpu.memory_space<vmem>>, vector<32x128xbf16>
    %cst = arith.constant dense<0.000000e+00> : vector<16x128xf32>
    %3 = tpu.matmul %1, %2, %cst {dimension_numbers = #tpu.dot_dimension_numbers<[1], [0], [0], [1], [0, 0, 1, 1], [], []>} : vector<16x32xbf16>, vector<32x128xbf16>, vector<16x128xf32> -> vector<16x128xf32>
    %c0_3 = arith.constant 0 : index
    %c0_4 = arith.constant 0 : index
    %4 = vector.load %arg3[%c0_3, %c0_4] : memref<1x128xf32, #tpu.memory_space<vmem>>, vector<1x128xf32>
    %5 = vector.broadcast %4 : vector<1x128xf32> to vector<16x128xf32>
    %6 = arith.addf %3, %5 : vector<16x128xf32>
    %cst_5 = arith.constant 0.000000e+00 : f32
    %7 = vector.broadcast %cst_5 : f32 to vector<16x128xf32>
    %8 = arith.maximumf %6, %7 : vector<16x128xf32>
    %9 = arith.truncf %8 : vector<16x128xf32> to vector<16x128xbf16>
    %c0_6 = arith.constant 0 : index
    %c0_7 = arith.constant 0 : index
    %10 = vector.load %arg4[%c0_6, %c0_7] : memref<128x512xbf16, #tpu.memory_space<vmem>>, vector<128x512xbf16>
    %cst_8 = arith.constant dense<0.000000e+00> : vector<16x512xf32>
    %11 = tpu.matmul %9, %10, %cst_8 {dimension_numbers = #tpu.dot_dimension_numbers<[1], [0], [0], [1], [0, 0, 1, 1], [], []>} : vector<16x128xbf16>, vector<128x512xbf16>, vector<16x512xf32> -> vector<16x512xf32>
    %c0_9 = arith.constant 0 : index
    %c0_10 = arith.constant 0 : index
    %12 = vector.load %arg5[%c0_9, %c0_10] : memref<1x512xf32, #tpu.memory_space<vmem>>, vector<1x512xf32>
    %13 = vector.broadcast %12 : vector<1x512xf32> to vector<16x512xf32>
    %14 = arith.addf %11, %13 : vector<16x512xf32>
    %cst_11 = arith.constant 0.000000e+00 : f32
    %15 = vector.broadcast %cst_11 : f32 to vector<16x512xf32>
    %16 = arith.maximumf %14, %15 : vector<16x512xf32>
    %17 = arith.truncf %16 : vector<16x512xf32> to vector<16x512xbf16>
    %c0_12 = arith.constant 0 : index
    %c0_13 = arith.constant 0 : index
    %18 = vector.load %arg6[%c0_12, %c0_13] : memref<512x256xbf16, #tpu.memory_space<vmem>>, vector<512x256xbf16>
    %cst_14 = arith.constant dense<0.000000e+00> : vector<16x256xf32>
    %19 = tpu.matmul %17, %18, %cst_14 {dimension_numbers = #tpu.dot_dimension_numbers<[1], [0], [0], [1], [0, 0, 1, 1], [], []>} : vector<16x512xbf16>, vector<512x256xbf16>, vector<16x256xf32> -> vector<16x256xf32>
    %c0_15 = arith.constant 0 : index
    %c0_16 = arith.constant 0 : index
    %20 = vector.load %arg7[%c0_15, %c0_16] : memref<1x256xf32, #tpu.memory_space<vmem>>, vector<1x256xf32>
    %21 = vector.broadcast %20 : vector<1x256xf32> to vector<16x256xf32>
    %22 = arith.addf %19, %21 : vector<16x256xf32>
    %c0_17 = arith.constant 0 : index
    %c0_18 = arith.constant 0 : index
    %23 = vector.load %arg8[%c0_17, %c0_18] : memref<16x256xf32, #tpu.memory_space<vmem>>, vector<16x256xf32>
    tpu.vector_store %arg8[%c0_17, %c0_18], %22 {strides = array<i32>} : memref<16x256xf32, #tpu.memory_space<vmem>>, vector<16x256xf32>,
    return
  }
  func.func @transform_0(%arg0: i32) -> (i32, i32) {
    %c0_i32 = arith.constant 0 : i32
    %c0_i32_0 = arith.constant 0 : i32
    return %arg0, %c0_i32 : i32, i32
  }
  func.func @transform_1(%arg0: i32) -> (i32, i32) {
    %c0_i32 = arith.constant 0 : i32
    %c0_i32_0 = arith.constant 0 : i32
    %c0_i32_1 = arith.constant 0 : i32
    return %c0_i32, %c0_i32_0 : i32, i32
  }
  func.func @transform_2(%arg0: i32) -> (i32, i32) {
    %c0_i32 = arith.constant 0 : i32
    %c0_i32_0 = arith.constant 0 : i32
    %c0_i32_1 = arith.constant 0 : i32
    return %c0_i32, %c0_i32_0 : i32, i32
  }
  func.func @transform_3(%arg0: i32) -> (i32, i32) {
    %c0_i32 = arith.constant 0 : i32
    %c0_i32_0 = arith.constant 0 : i32
    %c0_i32_1 = arith.constant 0 : i32
    return %c0_i32, %c0_i32_0 : i32, i32
  }
  func.func @transform_4(%arg0: i32) -> (i32, i32) {
    %c0_i32 = arith.constant 0 : i32
    %c0_i32_0 = arith.constant 0 : i32
    %c0_i32_1 = arith.constant 0 : i32
    return %c0_i32, %c0_i32_0 : i32, i32
  }
  func.func @transform_5(%arg0: i32) -> (i32, i32) {
    %c0_i32 = arith.constant 0 : i32
    %c0_i32_0 = arith.constant 0 : i32
    %c0_i32_1 = arith.constant 0 : i32
    return %c0_i32, %c0_i32_0 : i32, i32
  }
  func.func @transform_6(%arg0: i32) -> (i32, i32) {
    %c0_i32 = arith.constant 0 : i32
    %c0_i32_0 = arith.constant 0 : i32
    %c0_i32_1 = arith.constant 0 : i32
    return %c0_i32, %c0_i32_0 : i32, i32
  }
  func.func @transform_7(%arg0: i32) -> (i32, i32) {
    %c0_i32 = arith.constant 0 : i32
    %c0_i32_0 = arith.constant 0 : i32
    return %arg0, %c0_i32 : i32, i32
  }
}

</mosaic_0001>

<bundles_post_ra>
// kernel: tpu_custom_call.1
= control target key start
LH: loop header
LB: loop body
LE: loop exit
PB: predicated region body
PF: predicated region fallthrough
CT: control target
= control target key end

     0   :  { %12 = vsyncpa [#allocation3], 0  ;;  %s1506_s0 = inlined_call_operand.hbm [shape: f32[16,32], index: 0, kind: input, shape index: {}]   ;;  %s1507_s1 = inlined_call_operand.hbm [shape: bf16[32,128], index: 1, kind: input, shape index: {}]   ;;  %s1508_s2 = inlined_call_operand.vmem [shape: f32[1,128], index: 2, kind: input, shape index: {}]   ;;  %s1509_s3 = inlined_call_operand.hbm [shape: bf16[128,512], index: 3, kind: input, shape index: {}]   ;;  %s1510_s4 = inlined_call_operand.vmem [shape: f32[1,512], index: 4, kind: input, shape index: {}]   ;;  %s1511_s5 = inlined_call_operand.hbm [shape: bf16[512,256], index: 5, kind: input, shape index: {}]   ;;  %s1512_s6 = inlined_call_operand.vmem [shape: f32[1,256], index: 6, kind: input, shape index: {}]   ;;  %s1513_s7 = inlined_call_operand.hbm [shape: f32[16,256], index: 7, kind: output, shape index: {}]  }
   0x1   :  { %13 = vsyncpa [#allocation6], 0 }
   0x2   :  { %14 = vsyncpa [#allocation9], 0 }
   0x3   :  { %15 = vsyncpa [#allocation4], 0  ;;  %s1371_s24 = smov [#allocation5]   ;;  %s1253_s28 = scalar_lea.hbm %s1507_s1, 256 }
   0x4   :  { %s33_s25 = sshll.u32 %s1371_s24, 4  ;;  %p1254_p0 = scmp.ne.s32.totalorder %s1507_s1, %s1253_s28  ;;  %s34_s25 = int_to_ptr.vmem [resolvable:$true] %s33_s25 }
   0x5   :  { %p1257_p1 = scmp.lt.u32.totalorder %s1253_s28, %s1507_s1 }
   0x7   :  { %p1259_p2 = pnand %p1257_p1, %p1254_p0 }
   0x9   :  { %1262 = shalt.err (!%p1259_p2)
}
   0xa   :  { %s1263_s10 = scalar_lea.vmem %s34_s25, 256  ;;  %p1268_p4 = scmp.lt.s32.totalorder %s34_s25, %s34_s25 }
   0xb   :  { %p1264_p3 = scmp.ne.s32.totalorder %s34_s25, %s1263_s10  ;;  %p1269_p5 = scmp.lt.s32.totalorder %s1263_s10, %s1263_s10 }
   0xd   :  { %p1270_p6 = por %p1269_p5, %p1268_p4 }
   0xf   :  { %p1271_p7 = pnand %p1270_p6, %p1264_p3 }
  0x11   :  { %1274 = shalt.err (!%p1271_p7)
}
  0x12   :  { %s1372_s11 = smov 64   ;;  %s1373_s12 = smov 4  }
  0x13   :  { %39 = dma.hbm_to_vmem [thread:$0]  %s1507_s1, 256, %s34_s25, [#allocation6], %s1372_s11, %s1372_s11, %s1373_s12  }
  0x14   :  { %s1374_s15 = smov [#allocation2]   ;;  %s1275_s19 = scalar_lea.hbm %s1506_s0, 256 }
  0x15   :  { %s21_s16 = sshll.u32 %s1374_s15, 4  ;;  %p1276_p8 = scmp.ne.s32.totalorder %s1506_s0, %s1275_s19  ;;  %s22_s16 = int_to_ptr.vmem [resolvable:$true] %s21_s16 }
  0x16   :  { %p1279_p9 = scmp.lt.u32.totalorder %s1275_s19, %s1506_s0 }
  0x18   :  { %p1281_p10 = pnand %p1279_p9, %p1276_p8 }
  0x1a   :  { %1284 = shalt.err (!%p1281_p10)
}
  0x1b   :  { %s1285_s24 = scalar_lea.vmem %s22_s16, 256  ;;  %p1290_p12 = scmp.lt.s32.totalorder %s22_s16, %s22_s16 }
  0x1c   :  { %p1286_p11 = scmp.ne.s32.totalorder %s22_s16, %s1285_s24  ;;  %p1291_p13 = scmp.lt.s32.totalorder %s1285_s24, %s1285_s24 }
  0x1e   :  { %p1292_p0 = por %p1291_p13, %p1290_p12 }
  0x20   :  { %p1293_p1 = pnand %p1292_p0, %p1286_p11 }
  0x22   :  { %1296 = shalt.err (!%p1293_p1)
}
  0x23   :  { %s1375_s1 = smov 128   ;;  %s1376_s25 = smov 8  }
  0x24   :  { %27 = dma.hbm_to_vmem [thread:$0]  %s1506_s0, 256, %s22_s16, [#allocation3], %s1375_s1, %s1375_s1, %s1376_s25  }
  0x25   :  { %s1377_s28 = smov [#allocation7]   ;;  %s1297_s9 = scalar_lea.hbm %s1509_s3, 4096 }
  0x26   :  { %s47_s29 = sshll.u32 %s1377_s28, 4  ;;  %p1298_p2 = scmp.ne.s32.totalorder %s1509_s3, %s1297_s9  ;;  %s48_s29 = int_to_ptr.vmem [resolvable:$true] %s47_s29 }
  0x27   :  { %p1301_p3 = scmp.lt.u32.totalorder %s1297_s9, %s1509_s3 }
  0x29   :  { %p1303_p4 = pnand %p1301_p3, %p1298_p2 }
  0x2b   :  { %1306 = shalt.err (!%p1303_p4)
}
  0x2c   :  { %s1307_s14 = scalar_lea.vmem %s48_s29, 4096  ;;  %p1312_p6 = scmp.lt.s32.totalorder %s48_s29, %s48_s29 }
  0x2d   :  { %p1308_p5 = scmp.ne.s32.totalorder %s48_s29, %s1307_s14  ;;  %p1313_p7 = scmp.lt.s32.totalorder %s1307_s14, %s1307_s14 }
  0x2f   :  { %p1314_p8 = por %p1313_p7, %p1312_p6 }
  0x31   :  { %p1315_p9 = pnand %p1314_p8, %p1308_p5 }
  0x33   :  { %1318 = shalt.err (!%p1315_p9)
}
  0x34   :  { %s1378_s0 = smov 256   ;;  %s1379_s15 = smov 16  }
  0x35   :  { %53 = dma.hbm_to_vmem [thread:$0]  %s1509_s3, 4096, %s48_s29, [#allocation6], %s1378_s0, %s1378_s0, %s1379_s15  }
  0x36   :  { %s1380_s18 = smov [#allocation8]   ;;  %s1319_s22 = scalar_lea.hbm %s1511_s5, 8192 }
  0x37   :  { %s61_s19 = sshll.u32 %s1380_s18, 4  ;;  %p1320_p10 = scmp.ne.s32.totalorder %s1511_s5, %s1319_s22  ;;  %s62_s19 = int_to_ptr.vmem [resolvable:$true] %s61_s19 }
  0x38   :  { %p1323_p11 = scmp.lt.u32.totalorder %s1319_s22, %s1511_s5 }
  0x3a   :  { %p1325_p12 = pnand %p1323_p11, %p1320_p10 }
  0x3c   :  { %1328 = shalt.err (!%p1325_p12)
}
  0x3d   :  { %s1329_s28 = scalar_lea.vmem %s62_s19, 8192  ;;  %p1334_p0 = scmp.lt.s32.totalorder %s62_s19, %s62_s19 }
  0x3e   :  { %p1330_p13 = scmp.ne.s32.totalorder %s62_s19, %s1329_s28  ;;  %p1335_p1 = scmp.lt.s32.totalorder %s1329_s28, %s1329_s28 }
  0x40   :  { %p1336_p2 = por %p1335_p1, %p1334_p0 }
  0x42   :  { %p1337_p3 = pnand %p1336_p2, %p1330_p13 }
  0x44   :  { %1340 = shalt.err (!%p1337_p3)
}
  0x45   :  { %67 = dma.hbm_to_vmem [thread:$0]  %s1511_s5, 8192, %s62_s19, [#allocation9], %s1375_s1, %s1375_s1, %s1376_s25  }
  0x46   :  { %1363 = dma.done.wait [#allocation3], 256  }
  0x47   :  { %1364 = vsyncadd [#allocation3], 4294967040 }
  0x48   :  { %1365 = dma.done.wait [#allocation6], 4352  }
  0x49   :  { %1366 = vsyncadd [#allocation6], 4294962944 }
  0x4a   :  { %1367 = dma.done.wait [#allocation9], 8192  }
  0x4b   :  { %1368 = vsyncadd [#allocation9], 4294959104  ;;  %v1381_v0 = vmov 0.0   ;;  %vm1382_vm0 = vmmov 0   ;;  %v1107_v1 = vld [vmem:[#allocation5] sm:$0xff]   ;;  %v1108_v2 = vld [vmem:[#allocation5 + $0x8] sm:$0xff]  }
  0x4c   :  { %1077 = vmatprep.subr.bf16.mxu0 %v1381_v0  ;;  %1081 = vmatprep.mubr.msk.bf16.mxu0 %vm1382_vm0, %v1381_v0  ;;  %v83_v3 = vld [vmem:[#allocation2] sm:$0xff]  ;;  %v84_v4 = vld [vmem:[#allocation2 + $0x8] sm:$0xff]  ;;  %vm109_vm1 = vcmask 261120   ;;  %v1383_v38 = vmov 0   ;;  %v1165_v53 = vld [vmem:[#allocation8 + $0x14] ss:$8 sps:$4 sm:$0xff]  }
  0x4d   :  { %1078 = vmatpush3.bf16.msra.mxu0 %v1107_v1  ;;  %v1109_v5 = vld [vmem:[#allocation7 + $0x4] ss:$16 sps:$4 sm:$0xff]   ;;  %v1111_v6 = vld [vmem:[#allocation7 + $0x8] ss:$16 sps:$4 sm:$0xff]   ;;  %v1113_v7 = vld [vmem:[#allocation7 + $0xc] ss:$16 sps:$4 sm:$0xff]   ;;  %v85_v8 = vpack.c.bf16 %v84_v4, %v83_v3  ;;  %403 = vmatprep.mubr.bf16.mxu1 %v1383_v38 }
  0x4e   :  { %1079 = vmatprep.subr.bf16.mxu0 %v1381_v0  ;;  %371 = vmatprep.subr.bf16.mxu1 %v1109_v5  ;;  %v1114_v9 = vld [vmem:[#allocation7] ss:$16 sps:$4 sm:$0xff]   ;;  %v1115_v10 = vld [vmem:[#allocation7 + $0x24] ss:$16 sps:$4 sm:$0xff]   ;;  %v1119_v11 = vld [vmem:[#allocation7 + $0x2c] ss:$16 sps:$4 sm:$0xff]  }
  0x4f   :  { %372 = vmatpush1.bf16.msra.mxu1 %v1114_v9  ;;  %v1120_v12 = vld [vmem:[#allocation7 + $0x20] ss:$16 sps:$4 sm:$0xff]   ;;  %v1121_v13 = vld [vmem:[#allocation7 + $0x44] ss:$16 sps:$4 sm:$0xff]   ;;  %v1117_v14 = vld [vmem:[#allocation7 + $0x28] ss:$16 sps:$4 sm:$0xff]  }
  0x50   :  { %373 = vmatprep.subr.bf16.mxu1 %v1115_v10  ;;  %v1125_v15 = vld [vmem:[#allocation7 + $0x4c] ss:$16 sps:$4 sm:$0xff]   ;;  %v1126_v16 = vld [vmem:[#allocation7 + $0x40] ss:$16 sps:$4 sm:$0xff]   ;;  %v1127_v17 = vld [vmem:[#allocation7 + $0x64] ss:$16 sps:$4 sm:$0xff]  }
  0x51   :  { %1080 = vmatpush3.bf16.msra.mxu0 %v1108_v2  ;;  %v1123_v18 = vld [vmem:[#allocation7 + $0x48] ss:$16 sps:$4 sm:$0xff]   ;;  %v1131_v19 = vld [vmem:[#allocation7 + $0x6c] ss:$16 sps:$4 sm:$0xff]   ;;  %v1132_v20 = vld [vmem:[#allocation7 + $0x60] ss:$16 sps:$4 sm:$0xff]  }
  0x52   :  { %414 = vmatprep.subr.bf16.mxu0 %v1113_v7  ;;  %v1133_v21 = vld [vmem:[#allocation7 + $0x84] ss:$16 sps:$4 sm:$0xff]   ;;  %v1129_v22 = vld [vmem:[#allocation7 + $0x68] ss:$16 sps:$4 sm:$0xff]   ;;  %v1137_v23 = vld [vmem:[#allocation7 + $0x8c] ss:$16 sps:$4 sm:$0xff]  }
  0x53   :  { %374 = vmatpush1.bf16.msra.mxu1 %v1120_v12  ;;  %v1138_v24 = vld [vmem:[#allocation7 + $0x80] ss:$16 sps:$4 sm:$0xff]   ;;  %v1139_v25 = vld [vmem:[#allocation7 + $0xa4] ss:$16 sps:$4 sm:$0xff]   ;;  %v1135_v26 = vld [vmem:[#allocation7 + $0x88] ss:$16 sps:$4 sm:$0xff]  }
  0x54   :  { %1082 = vmatmul.mubr.msk.bf16.vlgmr.msra.gmra.mrb[0].mxu0 %vm109_vm1, %v85_v8  ;;  %375 = vmatprep.subr.bf16.mxu1 %v1121_v13  ;;  %v1143_v27 = vld [vmem:[#allocation7 + $0xac] ss:$16 sps:$4 sm:$0xff]   ;;  %v1144_v28 = vld [vmem:[#allocation7 + $0xa0] ss:$16 sps:$4 sm:$0xff]   ;;  %v1141_v29 = vld [vmem:[#allocation7 + $0xa8] ss:$16 sps:$4 sm:$0xff]  }
  0x55   :  { %415 = vmatpush1.bf16.msra.mxu0 %v1111_v6  ;;  %v1145_v30 = vld [vmem:[#allocation7 + $0xc4] ss:$16 sps:$4 sm:$0xff]   ;;  %v1149_v31 = vld [vmem:[#allocation7 + $0xcc] ss:$16 sps:$4 sm:$0xff]   ;;  %v1147_v32 = vld [vmem:[#allocation7 + $0xc8] ss:$16 sps:$4 sm:$0xff]   ;;  %446 = vmatprep.mubr.bf16.mxu0 %v1383_v38 }
  0x56   :  { %416 = vmatprep.subr.bf16.mxu0 %v1119_v11  ;;  %v1150_v33 = vld [vmem:[#allocation7 + $0xc0] ss:$16 sps:$4 sm:$0xff]   ;;  %v1151_v34 = vld [vmem:[#allocation7 + $0xe4] ss:$16 sps:$4 sm:$0xff]   ;;  %v1155_v35 = vld [vmem:[#allocation7 + $0xec] ss:$16 sps:$4 sm:$0xff]  }
  0x57   :  { %376 = vmatpush1.bf16.msra.mxu1 %v1126_v16  ;;  %v1153_v36 = vld [vmem:[#allocation7 + $0xe8] ss:$16 sps:$4 sm:$0xff]   ;;  %v1156_v37 = vld [vmem:[#allocation7 + $0xe0] ss:$16 sps:$4 sm:$0xff]   ;;  %v1159_v39 = vld [vmem:[#allocation8 + $0x4] ss:$8 sps:$4 sm:$0xff]  }
  0x58   :  { %377 = vmatprep.subr.bf16.mxu1 %v1127_v17  ;;  %v1162_v40 = vld [vmem:[#allocation8 + $0x104] ss:$8 sps:$4 sm:$0xff]   ;;  %v974_v41 = vld [vmem:[%s1508_s2] ss:$0 sm:$0xff]  ;;  %v1168_v54 = vld [vmem:[#allocation8 + $0x114] ss:$8 sps:$4 sm:$0xff]  }
  0x59   :  { %417 = vmatpush1.bf16.msra.mxu0 %v1117_v14  ;;  %v1157_v50 = vld [vmem:[#allocation8] ss:$8 sps:$4 sm:$0xff]   ;;  %v1163_v55 = vld [vmem:[#allocation8 + $0x10] ss:$8 sps:$4 sm:$0xff]   ;;  %v1171_v57 = vld [vmem:[#allocation8 + $0x24] ss:$8 sps:$4 sm:$0xff]  }
  0x5a   :  { %418 = vmatprep.subr.bf16.mxu0 %v1125_v15  ;;  %v1160_v51 = vld [vmem:[#allocation8 + $0x100] ss:$8 sps:$4 sm:$0xff]   ;;  %v1166_v56 = vld [vmem:[#allocation8 + $0x110] ss:$8 sps:$4 sm:$0xff]   ;;  %v1174_v58 = vld [vmem:[#allocation8 + $0x124] ss:$8 sps:$4 sm:$0xff]  }
  0x5b   :  { %378 = vmatpush1.bf16.msra.mxu1 %v1132_v20  ;;  %v1169_v59 = vld [vmem:[#allocation8 + $0x20] ss:$8 sps:$4 sm:$0xff]   ;;  %v1177_v61 = vld [vmem:[#allocation8 + $0x34] ss:$8 sps:$4 sm:$0xff]   ;;  %v1175_v63 = vld [vmem:[#allocation8 + $0x30] ss:$8 sps:$4 sm:$0xff]  }
  0x5c   :  { %379 = vmatprep.subr.bf16.mxu1 %v1133_v21  ;;  %v1172_v60 = vld [vmem:[#allocation8 + $0x120] ss:$8 sps:$4 sm:$0xff]   ;;  %v1180_v62 = vld [vmem:[#allocation8 + $0x134] ss:$8 sps:$4 sm:$0xff]   ;;  %v1178_v0 = vld [vmem:[#allocation8 + $0x130] ss:$8 sps:$4 sm:$0xff]  }
  0x5d   :  { %419 = vmatpush1.bf16.msra.mxu0 %v1123_v18  ;;  %v1183_v1 = vld [vmem:[#allocation8 + $0x44] ss:$8 sps:$4 sm:$0xff]   ;;  %v1181_v3 = vld [vmem:[#allocation8 + $0x40] ss:$8 sps:$4 sm:$0xff]   ;;  %v1189_v5 = vld [vmem:[#allocation8 + $0x54] ss:$8 sps:$4 sm:$0xff]  }
  0x5e   :  { %420 = vmatprep.subr.bf16.mxu0 %v1131_v19  ;;  %v1186_v2 = vld [vmem:[#allocation8 + $0x144] ss:$8 sps:$4 sm:$0xff]   ;;  %v1184_v4 = vld [vmem:[#allocation8 + $0x140] ss:$8 sps:$4 sm:$0xff]   ;;  %v1192_v6 = vld [vmem:[#allocation8 + $0x154] ss:$8 sps:$4 sm:$0xff]  }
  0x5f   :  { %380 = vmatpush1.bf16.msra.mxu1 %v1138_v24  ;;  %v1187_v7 = vld [vmem:[#allocation8 + $0x50] ss:$8 sps:$4 sm:$0xff]   ;;  %v1195_v9 = vld [vmem:[#allocation8 + $0x64] ss:$8 sps:$4 sm:$0xff]   ;;  %v1193_v11 = vld [vmem:[#allocation8 + $0x60] ss:$8 sps:$4 sm:$0xff]  }
  0x60   :  { %381 = vmatprep.subr.bf16.mxu1 %v1139_v25  ;;  %v1190_v8 = vld [vmem:[#allocation8 + $0x150] ss:$8 sps:$4 sm:$0xff]   ;;  %v1198_v10 = vld [vmem:[#allocation8 + $0x164] ss:$8 sps:$4 sm:$0xff]   ;;  %v1196_v12 = vld [vmem:[#allocation8 + $0x160] ss:$8 sps:$4 sm:$0xff]  }
  0x61   :  { %421 = vmatpush1.bf16.msra.mxu0 %v1129_v22  ;;  %v1201_v13 = vld [vmem:[#allocation8 + $0x74] ss:$8 sps:$4 sm:$0xff]   ;;  %v1199_v15 = vld [vmem:[#allocation8 + $0x70] ss:$8 sps:$4 sm:$0xff]   ;;  %v1207_v17 = vld [vmem:[#allocation8 + $0x84] ss:$8 sps:$4 sm:$0xff]  }
  0x62   :  { %422 = vmatprep.subr.bf16.mxu0 %v1137_v23  ;;  %v1204_v14 = vld [vmem:[#allocation8 + $0x174] ss:$8 sps:$4 sm:$0xff]   ;;  %v1202_v16 = vld [vmem:[#allocation8 + $0x170] ss:$8 sps:$4 sm:$0xff]   ;;  %v1210_v18 = vld [vmem:[#allocation8 + $0x184] ss:$8 sps:$4 sm:$0xff]  }
  0x63   :  { %382 = vmatpush1.bf16.msra.mxu1 %v1144_v28  ;;  %v1205_v19 = vld [vmem:[#allocation8 + $0x80] ss:$8 sps:$4 sm:$0xff]   ;;  %v1213_v21 = vld [vmem:[#allocation8 + $0x94] ss:$8 sps:$4 sm:$0xff]   ;;  %v1211_v23 = vld [vmem:[#allocation8 + $0x90] ss:$8 sps:$4 sm:$0xff]  }
  0x64   :  { %383 = vmatprep.subr.bf16.mxu1 %v1145_v30  ;;  %v1208_v20 = vld [vmem:[#allocation8 + $0x180] ss:$8 sps:$4 sm:$0xff]   ;;  %v1216_v22 = vld [vmem:[#allocation8 + $0x194] ss:$8 sps:$4 sm:$0xff]   ;;  %v1214_v24 = vld [vmem:[#allocation8 + $0x190] ss:$8 sps:$4 sm:$0xff]  }
  0x65   :  { %423 = vmatpush1.bf16.msra.mxu0 %v1135_v26  ;;  %v1219_v25 = vld [vmem:[#allocation8 + $0xa4] ss:$8 sps:$4 sm:$0xff]   ;;  %v1220_v28 = vld [vmem:[#allocation8 + $0x1a0] ss:$8 sps:$4 sm:$0xff]   ;;  %v1228_v30 = vld [vmem:[#allocation8 + $0x1b4] ss:$8 sps:$4 sm:$0xff]  }
  0x66   :  { %424 = vmatprep.subr.bf16.mxu0 %v1143_v27  ;;  %v1222_v26 = vld [vmem:[#allocation8 + $0x1a4] ss:$8 sps:$4 sm:$0xff]   ;;  %v1217_v27 = vld [vmem:[#allocation8 + $0xa0] ss:$8 sps:$4 sm:$0xff]   ;;  %v1240_v38 = vld [vmem:[#allocation8 + $0x1d4] ss:$8 sps:$4 sm:$0xff]  }
  0x67   :  { %384 = vmatpush1.bf16.msra.mxu1 %v1150_v33  ;;  %v1231_v33 = vld [vmem:[#allocation8 + $0xc4] ss:$8 sps:$4 sm:$0xff]   ;;  %s1384_s8 = smov [#allocation10]  }
  0x68   :  { %385 = vmatprep.subr.bf16.mxu1 %v1151_v34  ;;  %v1234_v34 = vld [vmem:[#allocation8 + $0x1c4] ss:$8 sps:$4 sm:$0xff]   ;;  %s960_s9 = sshll.u32 %s1384_s8, 4  ;;  %s961_s9 = int_to_ptr.vmem [resolvable:$true] %s960_s9 }
  0x69   :  { %425 = vmatpush1.bf16.msra.mxu0 %v1141_v29  ;;  %v1225_v29 = vld [vmem:[#allocation8 + $0xb4] ss:$8 sps:$4 sm:$0xff]   ;;  %p1346_p5 = scmp.lt.s32.totalorder %s961_s9, %s961_s9 }
  0x6a   :  { %426 = vmatprep.subr.bf16.mxu0 %v1149_v31  ;;  %v1223_v31 = vld [vmem:[#allocation8 + $0xb0] ss:$8 sps:$4 sm:$0xff]  }
  0x6b   :  { %386 = vmatpush1.bf16.msra.mxu1 %v1156_v37  ;;  %v1237_v37 = vld [vmem:[#allocation8 + $0xd4] ss:$8 sps:$4 sm:$0xff]  }
  0x6c   :  { %908 = vmatprep.subr.bf16.mxu1 %v1162_v40  ;;  %v1238_v40 = vld [vmem:[#allocation8 + $0x1d0] ss:$8 sps:$4 sm:$0xff]  }
  0x6d   :  { %427 = vmatpush1.bf16.msra.mxu0 %v1147_v32  ;;  %v1226_v32 = vld [vmem:[#allocation8 + $0x1b0] ss:$8 sps:$4 sm:$0xff]  }
  0x6e   :  { %428 = vmatprep.subr.bf16.mxu0 %v1155_v35  ;;  %v1229_v35 = vld [vmem:[#allocation8 + $0xc0] ss:$8 sps:$4 sm:$0xff]  }
  0x71   :  { %429 = vmatpush1.bf16.msra.mxu0 %v1153_v36  ;;  %v1232_v36 = vld [vmem:[#allocation8 + $0x1c0] ss:$8 sps:$4 sm:$0xff]  }
  0x72   :  { %865 = vmatprep.subr.bf16.mxu0 %v1159_v39  ;;  %v1235_v39 = vld [vmem:[#allocation8 + $0xd0] ss:$8 sps:$4 sm:$0xff]  }
 0x127   :  { %v147_v42 = vpop.f32.mrb[0].mxu0 }
 0x128   :  { %v148_v43 = vadd.f32 %v974_v41, %v147_v42  ;;  %v1083_v44 = vpop.f32.mrb[1].mxu0  ;;  %v1246_v42 = vld [vmem:[#allocation8 + $0x1e4] ss:$8 sps:$4 sm:$0xff]  }
 0x129   :  { %v150_v45 = vpop.f32.mrb[2].mxu0  ;;  %v1244_v44 = vld [vmem:[#allocation8 + $0x1e0] ss:$8 sps:$4 sm:$0xff]  }
 0x12a   :  { %v151_v46 = vadd.f32 %v974_v41, %v150_v45  ;;  %v1084_v47 = vpop.f32.mrb[3].mxu0  ;;  %v154_v48 = vmax.f32 %v148_v43, 0.0  ;;  %v1243_v41 = vld [vmem:[#allocation8 + $0xe4] ss:$8 sps:$4 sm:$0xff]   ;;  %v1241_v43 = vld [vmem:[#allocation8 + $0xe0] ss:$8 sps:$4 sm:$0xff]  }
 0x12b   :  { %v1249_v45 = vld [vmem:[#allocation8 + $0xf4] ss:$8 sps:$4 sm:$0xff]   ;;  %v1247_v47 = vld [vmem:[#allocation8 + $0xf0] ss:$8 sps:$4 sm:$0xff]  }
 0x12c   :  { %v155_v49 = vmax.f32 %v151_v46, 0.0  ;;  %v1252_v46 = vld [vmem:[#allocation8 + $0x1f4] ss:$8 sps:$4 sm:$0xff]  }
 0x12e   :  { %v156_v52 = vpack.c.bf16 %v155_v49, %v154_v48  ;;  %v1250_v48 = vld [vmem:[#allocation8 + $0x1f0] ss:$8 sps:$4 sm:$0xff]   ;;  %v191_v49 = vlaneseq }
 0x130   :  { %404 = vmatmul.mubr.bf16.vlgmr.msra.gmra.mrb[0].mxu1 %v156_v52  ;;  %447 = vmatmul.mubr.bf16.vlgmr.msra.gmra.mrb[4].mxu0 %v156_v52 }
 0x131   :  { %866 = vmatpush1.bf16.msra.mxu0 %v1157_v50  ;;  %909 = vmatpush1.bf16.msra.mxu1 %v1160_v51  ;;  %v192_v50 = vshrl.u32 %v191_v49, 7 }
 0x132   :  { %867 = vmatprep.subr.bf16.mxu0 %v1165_v53  ;;  %910 = vmatprep.subr.bf16.mxu1 %v1168_v54  ;;  %v189_v53 = vld [vmem:[%s1510_s4] sm:$0xf] }
 0x133   :  { %v193_v51 = vsub.s32 0, %v192_v50  ;;  %v201_v52 = vsub.s32 2, %v192_v50  ;;  %v197_v54 = vsub.s32 1, %v192_v50 }
 0x135   :  { %868 = vmatpush1.bf16.msra.mxu0 %v1163_v55  ;;  %911 = vmatpush1.bf16.msra.mxu1 %v1166_v56  ;;  %v205_v55 = vsub.s32 3, %v192_v50  ;;  %v194_v56 = vrot.slane %v189_v53, %v193_v51 }
 0x136   :  { %869 = vmatprep.subr.bf16.mxu0 %v1171_v57  ;;  %912 = vmatprep.subr.bf16.mxu1 %v1174_v58  ;;  %v202_v57 = vrot.slane %v189_v53, %v201_v52  ;;  %v198_v58 = vrot.slane %v189_v53, %v197_v54 }
 0x139   :  { %870 = vmatpush1.bf16.msra.mxu0 %v1169_v59  ;;  %913 = vmatpush1.bf16.msra.mxu1 %v1172_v60  ;;  %v206_v59 = vrot.slane %v189_v53, %v205_v55 }
 0x13a   :  { %871 = vmatprep.subr.bf16.mxu0 %v1177_v61  ;;  %914 = vmatprep.subr.bf16.mxu1 %v1180_v62 }
 0x13d   :  { %872 = vmatpush1.bf16.msra.mxu0 %v1175_v63  ;;  %915 = vmatpush1.bf16.msra.mxu1 %v1178_v0 }
 0x13e   :  { %873 = vmatprep.subr.bf16.mxu0 %v1183_v1  ;;  %916 = vmatprep.subr.bf16.mxu1 %v1186_v2 }
 0x141   :  { %874 = vmatpush1.bf16.msra.mxu0 %v1181_v3  ;;  %917 = vmatpush1.bf16.msra.mxu1 %v1184_v4 }
 0x142   :  { %875 = vmatprep.subr.bf16.mxu0 %v1189_v5  ;;  %918 = vmatprep.subr.bf16.mxu1 %v1192_v6 }
 0x145   :  { %876 = vmatpush1.bf16.msra.mxu0 %v1187_v7  ;;  %919 = vmatpush1.bf16.msra.mxu1 %v1190_v8 }
 0x146   :  { %877 = vmatprep.subr.bf16.mxu0 %v1195_v9  ;;  %920 = vmatprep.subr.bf16.mxu1 %v1198_v10 }
 0x149   :  { %878 = vmatpush1.bf16.msra.mxu0 %v1193_v11  ;;  %921 = vmatpush1.bf16.msra.mxu1 %v1196_v12 }
 0x14a   :  { %879 = vmatprep.subr.bf16.mxu0 %v1201_v13  ;;  %922 = vmatprep.subr.bf16.mxu1 %v1204_v14 }
 0x14d   :  { %880 = vmatpush1.bf16.msra.mxu0 %v1199_v15  ;;  %923 = vmatpush1.bf16.msra.mxu1 %v1202_v16 }
 0x14e   :  { %881 = vmatprep.subr.bf16.mxu0 %v1207_v17  ;;  %924 = vmatprep.subr.bf16.mxu1 %v1210_v18 }
 0x151   :  { %882 = vmatpush1.bf16.msra.mxu0 %v1205_v19  ;;  %925 = vmatpush1.bf16.msra.mxu1 %v1208_v20 }
 0x152   :  { %883 = vmatprep.subr.bf16.mxu0 %v1213_v21  ;;  %926 = vmatprep.subr.bf16.mxu1 %v1216_v22 }
 0x155   :  { %884 = vmatpush1.bf16.msra.mxu0 %v1211_v23  ;;  %927 = vmatpush1.bf16.msra.mxu1 %v1214_v24  ;;  %v533_v24 = vld [vmem:[%s1512_s6] sm:$0x3]  ;;  %s1341_s6 = scalar_lea.vmem %s961_s9, 512 }
 0x156   :  { %885 = vmatprep.subr.bf16.mxu0 %v1219_v25  ;;  %928 = vmatprep.subr.bf16.mxu1 %v1222_v26  ;;  %v538_v25 = vrot.slane %v533_v24, %v193_v51  ;;  %v542_v26 = vrot.slane %v533_v24, %v197_v54  ;;  %p1342_p4 = scmp.ne.s32.totalorder %s961_s9, %s1341_s6  ;;  %p1347_p6 = scmp.lt.s32.totalorder %s1341_s6, %s1341_s6 }
 0x158   :  { %p1348_p7 = por %p1347_p6, %p1346_p5 }
 0x159   :  { %886 = vmatpush1.bf16.msra.mxu0 %v1217_v27  ;;  %929 = vmatpush1.bf16.msra.mxu1 %v1220_v28 }
 0x15a   :  { %887 = vmatprep.subr.bf16.mxu0 %v1225_v29  ;;  %930 = vmatprep.subr.bf16.mxu1 %v1228_v30  ;;  %p1349_p8 = pnand %p1348_p7, %p1342_p4 }
 0x15d   :  { %888 = vmatpush1.bf16.msra.mxu0 %v1223_v31  ;;  %931 = vmatpush1.bf16.msra.mxu1 %v1226_v32 }
 0x15e   :  { %889 = vmatprep.subr.bf16.mxu0 %v1231_v33  ;;  %932 = vmatprep.subr.bf16.mxu1 %v1234_v34 }
 0x161   :  { %890 = vmatpush1.bf16.msra.mxu0 %v1229_v35  ;;  %933 = vmatpush1.bf16.msra.mxu1 %v1232_v36 }
 0x162   :  { %891 = vmatprep.subr.bf16.mxu0 %v1237_v37  ;;  %934 = vmatprep.subr.bf16.mxu1 %v1240_v38 }
 0x165   :  { %892 = vmatpush1.bf16.msra.mxu0 %v1235_v39  ;;  %935 = vmatpush1.bf16.msra.mxu1 %v1238_v40 }
 0x166   :  { %893 = vmatprep.subr.bf16.mxu0 %v1243_v41  ;;  %936 = vmatprep.subr.bf16.mxu1 %v1246_v42 }
 0x169   :  { %894 = vmatpush1.bf16.msra.mxu0 %v1241_v43  ;;  %937 = vmatpush1.bf16.msra.mxu1 %v1244_v44 }
 0x16a   :  { %895 = vmatprep.subr.bf16.mxu0 %v1249_v45  ;;  %938 = vmatprep.subr.bf16.mxu1 %v1252_v46 }
 0x16d   :  { %896 = vmatpush1.bf16.msra.mxu0 %v1247_v47  ;;  %939 = vmatpush1.bf16.msra.mxu1 %v1250_v48 }
 0x203   :  { %v405_v60 = vpop.f32.mrb[0].mxu1  ;;  %v448_v61 = vpop.f32.mrb[4].mxu0 }
 0x204   :  { %v406_v62 = vadd.f32 %v405_v60, %v194_v56  ;;  %v449_v63 = vadd.f32 %v448_v61, %v202_v57  ;;  %v407_v0 = vpop.f32.mrb[1].mxu1  ;;  %v450_v1 = vpop.f32.mrb[5].mxu0 }
 0x205   :  { %v408_v2 = vadd.f32 %v407_v0, %v198_v58  ;;  %v451_v3 = vadd.f32 %v450_v1, %v206_v59  ;;  %v409_v4 = vpop.f32.mrb[2].mxu1  ;;  %v452_v5 = vpop.f32.mrb[6].mxu0 }
 0x206   :  { %v410_v6 = vadd.f32 %v409_v4, %v194_v56  ;;  %v453_v7 = vadd.f32 %v452_v5, %v202_v57  ;;  %v411_v8 = vpop.f32.mrb[3].mxu1  ;;  %v454_v9 = vpop.f32.mrb[7].mxu0  ;;  %v457_v12 = vmax.f32 %v406_v62, 0.0  ;;  %v459_v13 = vmax.f32 %v449_v63, 0.0 }
 0x207   :  { %v412_v10 = vadd.f32 %v411_v8, %v198_v58  ;;  %v455_v11 = vadd.f32 %v454_v9, %v206_v59  ;;  %v458_v16 = vmax.f32 %v408_v2, 0.0  ;;  %v460_v17 = vmax.f32 %v451_v3, 0.0 }
 0x208   :  { %v461_v14 = vmax.f32 %v410_v6, 0.0  ;;  %v463_v15 = vmax.f32 %v453_v7, 0.0 }
 0x209   :  { %v462_v18 = vmax.f32 %v412_v10, 0.0  ;;  %v464_v19 = vmax.f32 %v455_v11, 0.0 }
 0x20a   :  { %v465_v20 = vpack.c.bf16 %v461_v14, %v457_v12  ;;  %v467_v21 = vpack.c.bf16 %v463_v15, %v459_v13 }
 0x20b   :  { %v466_v22 = vpack.c.bf16 %v462_v18, %v458_v16  ;;  %v468_v23 = vpack.c.bf16 %v464_v19, %v460_v17 }
 0x20d   :  { %897 = vmatprep.mubr.bf16.mxu0 %v466_v22  ;;  %940 = vmatprep.mubr.bf16.mxu1 %v468_v23 }
 0x20e   :  { %898 = vmatmul.mubr.bf16.vlgmr.msra.gmra.mrb[8].mxu0 %v465_v20  ;;  %941 = vmatmul.mubr.bf16.vlgmr.msra.gmra.mrb[4].mxu1 %v467_v21 }
 0x2e1   :  { %v899_v27 = vpop.f32.mrb[8].mxu0  ;;  %v942_v28 = vpop.f32.mrb[4].mxu1 }
 0x2e2   :  { %v900_v29 = vadd.f32 %v899_v27, %v538_v25  ;;  %v901_v30 = vpop.f32.mrb[9].mxu0  ;;  %v944_v31 = vpop.f32.mrb[5].mxu1 }
 0x2e3   :  { %v902_v32 = vadd.f32 %v901_v30, %v542_v26  ;;  %v903_v33 = vpop.f32.mrb[10].mxu0  ;;  %v946_v34 = vpop.f32.mrb[6].mxu1 }
 0x2e4   :  { %v943_v35 = vadd.f32 %v942_v28, %v900_v29  ;;  %v904_v36 = vadd.f32 %v903_v33, %v538_v25  ;;  %v905_v37 = vpop.f32.mrb[11].mxu0  ;;  %v948_v38 = vpop.f32.mrb[7].mxu1 }
 0x2e5   :  { %v945_v39 = vadd.f32 %v944_v31, %v902_v32  ;;  %v906_v40 = vadd.f32 %v905_v37, %v542_v26 }
 0x2e6   :  { %951 = vst [vmem:[#allocation10] sm:$0xff] %v943_v35  ;;  %v947_v41 = vadd.f32 %v946_v34, %v904_v36 }
 0x2e7   :  { %952 = vst [vmem:[#allocation10 + $0x8] sm:$0xff] %v945_v39  ;;  %v949_v42 = vadd.f32 %v948_v38, %v906_v40 }
 0x2e8   :  { %953 = vst [vmem:[#allocation10 + $0x10] sm:$0xff] %v947_v41 }
 0x2e9   :  { %954 = vst [vmem:[#allocation10 + $0x18] sm:$0xff] %v949_v42 }
 0x2ea   :  { %1352 = shalt.err (!%p1349_p8)
}
 0x2eb   :  { %s1353_s12 = scalar_lea.hbm %s1513_s7, 512 }
 0x2ec   :  { %p1354_p9 = scmp.ne.s32.totalorder %s1513_s7, %s1353_s12  ;;  %p1357_p10 = scmp.lt.u32.totalorder %s1353_s12, %s1513_s7 }
 0x2ee   :  { %p1359_p11 = pnand %p1357_p10, %p1354_p9 }
 0x2f0   :  { %1362 = shalt.err (!%p1359_p11)
}
 0x2f1   :  { %966 = dma.vmem_to_hbm [thread:$0]  %s961_s9, 512, %s1513_s7, [#allocation4], %s1378_s0, %s1378_s0, %s1379_s15  }
 0x2f2   :  { %1369 = dma.done.wait [#allocation4], 512  }
 0x2f3   :  { %1370 = vsyncadd [#allocation4], 4294966784 }
 0x2f4   :  { %970 = vsyncpa [#allocation3], 1 }
 0x2f5   :  { %971 = vsyncpa [#allocation6], 1 }
 0x2f6   :  { %972 = vsyncpa [#allocation9], 1 }
 0x2f7   :  { %973 = vsyncpa [#allocation4], 1 }

</bundles_post_ra>
